<compile_context>
chip_gen: v5e
topology: v5e:2x2
jax: 0.10.0
libtpu: 0.0.40
codegen_flags: <defaults>
</compile_context>

<pallas_src>
import math
import jax
import jax.numpy as jnp
from jax.experimental import pallas as pl
from jax.experimental.pallas import tpu as pltpu


def _make_kernel(n_heads, n_kv_heads, head_dim, eps):
    n_rep = n_heads // n_kv_heads
    hd2 = head_dim // 2
    inv_scale = 1.0 / math.sqrt(head_dim)

    def kernel(x_ref, cos_ref, sin_ref,
               wq_ref, wk_ref, wv_ref, wo_ref, w1_ref, w2_ref, w3_ref,
               o_ref):
        S, D = x_ref.shape[1], x_ref.shape[2]
        x = x_ref[0]                                    # (S, D) float32

        def rmsnorm(v):
            # Gain is folded into the following linear layer's weights.
            ms = jnp.mean(v * v, axis=-1, keepdims=True)
            return v * jax.lax.rsqrt(ms + eps)

        def rope(t, cos, sin):
            # t: (heads, S, head_dim) in split-half layout [real | imag].
            tr = t[..., :hd2]
            ti = t[..., hd2:]
            return jnp.concatenate(
                [tr * cos - ti * sin, ti * cos + tr * sin], axis=-1)

        cos = cos_ref[...][None]                        # (1, S, hd/2) f32
        sin = sin_ref[...][None]

        # ---- attention norm + head-major QKV projections (bf16 MXU) ----
        xa = rmsnorm(x).astype(jnp.bfloat16)            # (S, D) bf16
        xa_h = jnp.broadcast_to(xa[None], (n_heads, S, D))
        xa_g = jnp.broadcast_to(xa[None], (n_kv_heads, S, D))

        q = jnp.einsum('hsd,hdf->hsf', xa_h, wq_ref[...],
                       preferred_element_type=jnp.float32)   # (H, S, hd)
        k = jnp.einsum('gsd,gdf->gsf', xa_g, wk_ref[...],
                       preferred_element_type=jnp.float32)   # (G, S, hd)
        v = jnp.einsum('gsd,gdf->gsf', xa_g, wv_ref[...],
                       preferred_element_type=jnp.float32)   # (G, S, hd)

        # ---- rotary embedding: rotate-half, no matmul ----
        q = (rope(q, cos, sin) * inv_scale).astype(jnp.bfloat16)
        k = rope(k, cos, sin).astype(jnp.bfloat16)
        v = v.astype(jnp.bfloat16)

        # ---- repeat_kv along the leading (head) axis ----
        k_rep = jnp.broadcast_to(k[:, None], (n_kv_heads, n_rep, S, head_dim)
                                 ).reshape(n_heads, S, head_dim)
        v_rep = jnp.broadcast_to(v[:, None], (n_kv_heads, n_rep, S, head_dim)
                                 ).reshape(n_heads, S, head_dim)

        # ---- causal attention; mask built in-kernel from iota ----
        scores = jnp.einsum('hqd,hkd->hqk', q, k_rep,
                            preferred_element_type=jnp.float32)  # (H, S, S)
        qpos = jax.lax.broadcasted_iota(jnp.int32, (S, S), 0)
        kpos = jax.lax.broadcasted_iota(jnp.int32, (S, S), 1)
        neg = jnp.where(kpos <= qpos, 0.0, -1e30).astype(jnp.float32)
        scores = scores + neg[None]

        m = jnp.max(scores, axis=-1, keepdims=True)
        p = jnp.exp(scores - m)
        p = p * pl.reciprocal(jnp.sum(p, axis=-1, keepdims=True), approx=True)

        o = jnp.einsum('hqk,hkd->hqd', p.astype(jnp.bfloat16), v_rep,
                       preferred_element_type=jnp.float32)       # (H, S, hd)

        # ---- output projection: per-head matmuls summed over heads ----
        part = jnp.einsum('hqd,hdf->hqf', o.astype(jnp.bfloat16), wo_ref[...],
                          preferred_element_type=jnp.float32)    # (H, S, D)
        h_res = x + jnp.sum(part, axis=0)                        # (S, D) f32

        # ---- FFN (SwiGLU); ffn-norm gain folded into w1/w3 ----
        hn = rmsnorm(h_res).astype(jnp.bfloat16)
        g = jnp.dot(hn, w1_ref[...], preferred_element_type=jnp.float32)
        u = jnp.dot(hn, w3_ref[...], preferred_element_type=jnp.float32)
        act = (g * jax.nn.sigmoid(g) * u).astype(jnp.bfloat16)
        ff = jnp.dot(act, w2_ref[...], preferred_element_type=jnp.float32)

        o_ref[0] = h_res + ff

    return kernel


def transformer_block_pallas(x, params, freqs_cos, freqs_sin,
                             *, n_heads, n_kv_heads, eps):
    B, S, D = x.shape
    head_dim = D // n_heads
    bf = jnp.bfloat16

    # ---- fold RMSNorm gains into the following linear layers ----
    anw = params["attn_norm_w"].reshape(D, 1)
    fnw = params["ffn_norm_w"].reshape(D, 1)
    wq = anw * params["wq"]
    wk = anw * params["wk"]
    wv = anw * params["wv"]
    w1 = fnw * params["w1"]
    w3 = fnw * params["w3"]

    # ---- head-major repack + split-half column permutation for RoPE ----
    perm = jnp.concatenate([jnp.arange(0, head_dim, 2),
                            jnp.arange(1, head_dim, 2)])
    wq_h = wq.reshape(D, n_heads, head_dim).transpose(1, 0, 2)[:, :, perm]
    wk_g = wk.reshape(D, n_kv_heads, head_dim).transpose(1, 0, 2)[:, :, perm]
    wv_g = wv.reshape(D, n_kv_heads, head_dim).transpose(1, 0, 2)
    wo_h = params["wo"].reshape(n_heads, head_dim, D)

    wq_h, wk_g, wv_g, wo_h = (w.astype(bf) for w in (wq_h, wk_g, wv_g, wo_h))
    w1b, w2b, w3b = w1.astype(bf), params["w2"].astype(bf), w3.astype(bf)

    kernel = _make_kernel(n_heads, n_kv_heads, head_dim, eps)

    def full(arr):
        n = arr.ndim
        return pl.BlockSpec(arr.shape, lambda b, _n=n: (0,) * _n)

    consts = [freqs_cos, freqs_sin, wq_h, wk_g, wv_g, wo_h, w1b, w2b, w3b]
    in_specs = ([pl.BlockSpec((1, S, D), lambda b: (b, 0, 0))]
                + [full(a) for a in consts])
    out_spec = pl.BlockSpec((1, S, D), lambda b: (b, 0, 0))

    return pl.pallas_call(
        kernel,
        out_shape=jax.ShapeDtypeStruct((B, S, D), jnp.float32),
        grid=(B,),
        in_specs=in_specs,
        out_specs=out_spec,
        compiler_params=pltpu.CompilerParams(
            dimension_semantics=("parallel",)),
    )(x, *consts)


# ---------------- pure-JAX reference (mirrors the torch forward) -------------

def _ref_rope(t, cos, sin, n_h, head_dim):
    B, S, _ = t.shape
    tr = t.reshape(B, S, n_h, head_dim // 2, 2)
    tre, tim = tr[..., 0], tr[..., 1]
    c = cos[None, :, None, :]
    s = sin[None, :, None, :]
    o_re = tre * c - tim * s
    o_im = tre * s + tim * c
    return jnp.stack([o_re, o_im], axis=-1).reshape(B, S, n_h * head_dim)


def transformer_block_ref(x, params, freqs_cos, freqs_sin, mask,
                          *, n_heads, n_kv_heads, eps):
    B, S, D = x.shape
    hd = D // n_heads
    n_rep = n_heads // n_kv_heads

    def rmsnorm(v, w):
        return v * jax.lax.rsqrt(jnp.mean(v * v, -1, keepdims=True) + eps) * w

    xa = rmsnorm(x, params["attn_norm_w"][0])
    xq = xa @ params["wq"]
    xk = xa @ params["wk"]
    xv = xa @ params["wv"]
    xq = _ref_rope(xq, freqs_cos, freqs_sin, n_heads, hd)
    xk = _ref_rope(xk, freqs_cos, freqs_sin, n_kv_heads, hd)

    q = xq.reshape(B, S, n_heads, hd).transpose(0, 2, 1, 3)
    k = jnp.repeat(xk.reshape(B, S, n_kv_heads, hd), n_rep, axis=2).transpose(0, 2, 1, 3)
    v = jnp.repeat(xv.reshape(B, S, n_kv_heads, hd), n_rep, axis=2).transpose(0, 2, 1, 3)

    scores = jnp.einsum('bhqd,bhkd->bhqk', q, k) / math.sqrt(hd) + mask[None, None]
    p = jax.nn.softmax(scores, axis=-1)
    o = jnp.einsum('bhqk,bhkd->bhqd', p, v).transpose(0, 2, 1, 3).reshape(B, S, D)

    h = x + o @ params["wo"]
    hn = rmsnorm(h, params["ffn_norm_w"][0])
    g = hn @ params["w1"]
    u = hn @ params["w3"]
    return h + (jax.nn.silu(g) * u) @ params["w2"]


if __name__ == "__main__":
    # Small, TransformerBlock-consistent config.
    B, S = 2, 8
    dim, n_heads, n_kv_heads = 64, 4, 2
    multiple_of = 32
    eps = 1e-5
    rope_theta = 500000.0
    head_dim = dim // n_heads

    # FeedForward hidden dim exactly as the module computes it.
    hidden = 4 * dim
    hidden = int(2 * hidden / 3)
    hidden = multiple_of * ((hidden + multiple_of - 1) // multiple_of)  # -> 192

    key = jax.random.PRNGKey(0)
    ks = jax.random.split(key, 10)
    sc = 0.05
    params = {
        "wq": jax.random.normal(ks[0], (dim, n_heads * head_dim), jnp.float32) * sc,
        "wk": jax.random.normal(ks[1], (dim, n_kv_heads * head_dim), jnp.float32) * sc,
        "wv": jax.random.normal(ks[2], (dim, n_kv_heads * head_dim), jnp.float32) * sc,
        "wo": jax.random.normal(ks[3], (n_heads * head_dim, dim), jnp.float32) * sc,
        "w1": jax.random.normal(ks[4], (dim, hidden), jnp.float32) * sc,
        "w2": jax.random.normal(ks[5], (hidden, dim), jnp.float32) * sc,
        "w3": jax.random.normal(ks[6], (dim, hidden), jnp.float32) * sc,
        # Non-trivial gains so the fold-into-weights path is actually exercised.
        "attn_norm_w": 1.0 + 0.1 * jax.random.normal(ks[8], (1, dim), jnp.float32),
        "ffn_norm_w": 1.0 + 0.1 * jax.random.normal(ks[9], (1, dim), jnp.float32),
    }

    x = jax.random.normal(ks[7], (B, S, dim), jnp.float32)

    # precompute_freqs_cis equivalent (cos/sin parts), seq len S, start_pos = 0.
    inv_freq = 1.0 / (rope_theta ** (jnp.arange(0, head_dim, 2, dtype=jnp.float32) / head_dim))
    t = jnp.arange(S, dtype=jnp.float32)
    angles = jnp.outer(t, inv_freq)                  # (S, head_dim // 2)
    freqs_cos = jnp.cos(angles)
    freqs_sin = jnp.sin(angles)

    out = transformer_block_pallas(
        x, params, freqs_cos, freqs_sin,
        n_heads=n_heads, n_kv_heads=n_kv_heads, eps=eps)
    out = jax.block_until_ready(out)

    # Reference (f32 everywhere, causal mask built like llama does for start_pos=0).
    mask = jnp.triu(jnp.full((S, S), float("-inf"), dtype=jnp.float32), k=1)
    ref = transformer_block_ref(
        x, params, freqs_cos, freqs_sin, mask,
        n_heads=n_heads, n_kv_heads=n_kv_heads, eps=eps)
    ref = jax.block_until_ready(ref)

    assert out.shape == (B, S, dim) and out.dtype == jnp.float32
    # bf16 matmul operands (per perf guidance) vs f32 reference -> looser bound.
    max_err = float(jnp.max(jnp.abs(out - ref)))
    assert max_err < 2e-2, f"mismatch vs reference: max abs err {max_err}"

    print("KERNEL_OK")
</pallas_src>

<mosaic_0001>
module attributes {stable_mosaic.version = 11 : i64} {
  func.func @kernel(%arg0: i32, %arg1: memref<1x8x64xf32, #tpu.memory_space<vmem>>, %arg2: memref<8x8xf32, #tpu.memory_space<vmem>>, %arg3: memref<8x8xf32, #tpu.memory_space<vmem>>, %arg4: memref<4x64x16xbf16, #tpu.memory_space<vmem>>, %arg5: memref<2x64x16xbf16, #tpu.memory_space<vmem>>, %arg6: memref<2x64x16xbf16, #tpu.memory_space<vmem>>, %arg7: memref<4x16x64xbf16, #tpu.memory_space<vmem>>, %arg8: memref<64x192xbf16, #tpu.memory_space<vmem>>, %arg9: memref<192x64xbf16, #tpu.memory_space<vmem>>, %arg10: memref<64x192xbf16, #tpu.memory_space<vmem>>, %arg11: memref<1x8x64xf32, #tpu.memory_space<vmem>>) attributes {dimension_semantics = [#tpu.dimension_semantics<parallel>], iteration_bounds = array<i64: 2>, scalar_prefetch = 0 : i64, scratch_operands = 0 : i64, tpu.core_type = #tpu.core_type<tc>, window_params = [{transform_indices = @transform_0, window_bounds = array<i64: 1, 8, 64>}, {pipeline_mode = #tpu.pipeline_mode<synchronous>, transform_indices = @transform_1, window_bounds = array<i64: 8, 8>}, {pipeline_mode = #tpu.pipeline_mode<synchronous>, transform_indices = @transform_2, window_bounds = array<i64: 8, 8>}, {pipeline_mode = #tpu.pipeline_mode<synchronous>, transform_indices = @transform_3, window_bounds = array<i64: 4, 64, 16>}, {pipeline_mode = #tpu.pipeline_mode<synchronous>, transform_indices = @transform_4, window_bounds = array<i64: 2, 64, 16>}, {pipeline_mode = #tpu.pipeline_mode<synchronous>, transform_indices = @transform_5, window_bounds = array<i64: 2, 64, 16>}, {pipeline_mode = #tpu.pipeline_mode<synchronous>, transform_indices = @transform_6, window_bounds = array<i64: 4, 16, 64>}, {pipeline_mode = #tpu.pipeline_mode<synchronous>, transform_indices = @transform_7, window_bounds = array<i64: 64, 192>}, {pipeline_mode = #tpu.pipeline_mode<synchronous>, transform_indices = @transform_8, window_bounds = array<i64: 192, 64>}, {pipeline_mode = #tpu.pipeline_mode<synchronous>, transform_indices = @transform_9, window_bounds = array<i64: 64, 192>}, {transform_indices = @transform_10, window_bounds = array<i64: 1, 8, 64>}]} {
    %c0 = arith.constant 0 : index
    %c0_0 = arith.constant 0 : index
    %c0_1 = arith.constant 0 : index
    %0 = vector.load %arg1[%c0, %c0_0, %c0_1] : memref<1x8x64xf32, #tpu.memory_space<vmem>>, vector<1x8x64xf32>
    %1 = vector.shape_cast %0 : vector<1x8x64xf32> to vector<8x64xf32>
    %c0_2 = arith.constant 0 : index
    %c0_3 = arith.constant 0 : index
    %2 = vector.load %arg2[%c0_2, %c0_3] : memref<8x8xf32, #tpu.memory_space<vmem>>, vector<8x8xf32>
    %3 = vector.shape_cast %2 : vector<8x8xf32> to vector<1x8x8xf32>
    %c0_4 = arith.constant 0 : index
    %c0_5 = arith.constant 0 : index
    %4 = vector.load %arg3[%c0_4, %c0_5] : memref<8x8xf32, #tpu.memory_space<vmem>>, vector<8x8xf32>
    %5 = vector.shape_cast %4 : vector<8x8xf32> to vector<1x8x8xf32>
    %6 = arith.mulf %1, %1 : vector<8x64xf32>
    %cst = arith.constant dense<0.000000e+00> : vector<8xf32>
    %7 = vector.multi_reduction <add>, %6, %cst [1] : vector<8x64xf32> to vector<8xf32>
    %8 = vector.shape_cast %7 : vector<8xf32> to vector<8x1xf32>
    %cst_6 = arith.constant 6.400000e+01 : f32
    %9 = vector.broadcast %cst_6 : f32 to vector<8x1xf32>
    %10 = arith.divf %8, %9 : vector<8x1xf32>
    %cst_7 = arith.constant 9.99999974E-6 : f32
    %11 = vector.broadcast %cst_7 : f32 to vector<8x1xf32>
    %12 = arith.addf %10, %11 : vector<8x1xf32>
    %13 = math.rsqrt %12 : vector<8x1xf32>
    %14 = vector.broadcast %13 : vector<8x1xf32> to vector<8x64xf32>
    %15 = arith.mulf %1, %14 : vector<8x64xf32>
    %16 = arith.truncf %15 : vector<8x64xf32> to vector<8x64xbf16>
    %17 = vector.shape_cast %16 : vector<8x64xbf16> to vector<1x8x64xbf16>
    %18 = vector.shape_cast %17 : vector<1x8x64xbf16> to vector<1x8x64xbf16>
    %19 = vector.broadcast %18 : vector<1x8x64xbf16> to vector<4x8x64xbf16>
    %20 = vector.shape_cast %16 : vector<8x64xbf16> to vector<1x8x64xbf16>
    %21 = vector.shape_cast %20 : vector<1x8x64xbf16> to vector<1x8x64xbf16>
    %22 = vector.broadcast %21 : vector<1x8x64xbf16> to vector<2x8x64xbf16>
    %c0_8 = arith.constant 0 : index
    %c0_9 = arith.constant 0 : index
    %c0_10 = arith.constant 0 : index
    %23 = vector.load %arg4[%c0_8, %c0_9, %c0_10] : memref<4x64x16xbf16, #tpu.memory_space<vmem>>, vector<4x64x16xbf16>
    "tpu.trace_start"() <{level = 10 : i32, message = "hsd,hdf->hsf"}> : () -> ()
    %cst_11 = arith.constant dense<0.000000e+00> : vector<4x8x16xf32>
    %24 = tpu.matmul %19, %23, %cst_11 {dimension_numbers = #tpu.dot_dimension_numbers<[2], [1], [1], [2], [0, 0, 0, 1, 1, 2], [0], [0]>} : vector<4x8x64xbf16>, vector<4x64x16xbf16>, vector<4x8x16xf32> -> vector<4x8x16xf32>
    "tpu.trace_stop"() : () -> ()
    %c0_12 = arith.constant 0 : index
    %c0_13 = arith.constant 0 : index
    %c0_14 = arith.constant 0 : index
    %25 = vector.load %arg5[%c0_12, %c0_13, %c0_14] : memref<2x64x16xbf16, #tpu.memory_space<vmem>>, vector<2x64x16xbf16>
    "tpu.trace_start"() <{level = 10 : i32, message = "gsd,gdf->gsf"}> : () -> ()
    %cst_15 = arith.constant dense<0.000000e+00> : vector<2x8x16xf32>
    %26 = tpu.matmul %22, %25, %cst_15 {dimension_numbers = #tpu.dot_dimension_numbers<[2], [1], [1], [2], [0, 0, 0, 1, 1, 2], [0], [0]>} : vector<2x8x64xbf16>, vector<2x64x16xbf16>, vector<2x8x16xf32> -> vector<2x8x16xf32>
    "tpu.trace_stop"() : () -> ()
    %c0_16 = arith.constant 0 : index
    %c0_17 = arith.constant 0 : index
    %c0_18 = arith.constant 0 : index
    %27 = vector.load %arg6[%c0_16, %c0_17, %c0_18] : memref<2x64x16xbf16, #tpu.memory_space<vmem>>, vector<2x64x16xbf16>
    "tpu.trace_start"() <{level = 10 : i32, message = "gsd,gdf->gsf"}> : () -> ()
    %cst_19 = arith.constant dense<0.000000e+00> : vector<2x8x16xf32>
    %28 = tpu.matmul %22, %27, %cst_19 {dimension_numbers = #tpu.dot_dimension_numbers<[2], [1], [1], [2], [0, 0, 0, 1, 1, 2], [0], [0]>} : vector<2x8x64xbf16>, vector<2x64x16xbf16>, vector<2x8x16xf32> -> vector<2x8x16xf32>
    "tpu.trace_stop"() : () -> ()
    %29 = vector.extract_strided_slice %24 {offsets = [0, 0, 0], sizes = [4, 8, 8], strides = [1, 1, 1]} : vector<4x8x16xf32> to vector<4x8x8xf32>
    %30 = vector.extract_strided_slice %24 {offsets = [0, 0, 8], sizes = [4, 8, 8], strides = [1, 1, 1]} : vector<4x8x16xf32> to vector<4x8x8xf32>
    %31 = vector.broadcast %3 : vector<1x8x8xf32> to vector<4x8x8xf32>
    %32 = arith.mulf %29, %31 : vector<4x8x8xf32>
    %33 = vector.broadcast %5 : vector<1x8x8xf32> to vector<4x8x8xf32>
    %34 = arith.mulf %30, %33 : vector<4x8x8xf32>
    %35 = arith.subf %32, %34 : vector<4x8x8xf32>
    %36 = vector.broadcast %3 : vector<1x8x8xf32> to vector<4x8x8xf32>
    %37 = arith.mulf %30, %36 : vector<4x8x8xf32>
    %38 = vector.broadcast %5 : vector<1x8x8xf32> to vector<4x8x8xf32>
    %39 = arith.mulf %29, %38 : vector<4x8x8xf32>
    %40 = arith.addf %37, %39 : vector<4x8x8xf32>
    %41 = tpu.concatenate %35, %40 in 2 : vector<4x8x8xf32>, vector<4x8x8xf32> -> vector<4x8x16xf32>
    %cst_20 = arith.constant 2.500000e-01 : f32
    %42 = vector.broadcast %cst_20 : f32 to vector<4x8x16xf32>
    %43 = arith.mulf %41, %42 : vector<4x8x16xf32>
    %44 = arith.truncf %43 : vector<4x8x16xf32> to vector<4x8x16xbf16>
    %45 = vector.extract_strided_slice %26 {offsets = [0, 0, 0], sizes = [2, 8, 8], strides = [1, 1, 1]} : vector<2x8x16xf32> to vector<2x8x8xf32>
    %46 = vector.extract_strided_slice %26 {offsets = [0, 0, 8], sizes = [2, 8, 8], strides = [1, 1, 1]} : vector<2x8x16xf32> to vector<2x8x8xf32>
    %47 = vector.broadcast %3 : vector<1x8x8xf32> to vector<2x8x8xf32>
    %48 = arith.mulf %45, %47 : vector<2x8x8xf32>
    %49 = vector.broadcast %5 : vector<1x8x8xf32> to vector<2x8x8xf32>
    %50 = arith.mulf %46, %49 : vector<2x8x8xf32>
    %51 = arith.subf %48, %50 : vector<2x8x8xf32>
    %52 = vector.broadcast %3 : vector<1x8x8xf32> to vector<2x8x8xf32>
    %53 = arith.mulf %46, %52 : vector<2x8x8xf32>
    %54 = vector.broadcast %5 : vector<1x8x8xf32> to vector<2x8x8xf32>
    %55 = arith.mulf %45, %54 : vector<2x8x8xf32>
    %56 = arith.addf %53, %55 : vector<2x8x8xf32>
    %57 = tpu.concatenate %51, %56 in 2 : vector<2x8x8xf32>, vector<2x8x8xf32> -> vector<2x8x16xf32>
    %58 = arith.truncf %57 : vector<2x8x16xf32> to vector<2x8x16xbf16>
    %59 = arith.truncf %28 : vector<2x8x16xf32> to vector<2x8x16xbf16>
    %60 = vector.shape_cast %58 : vector<2x8x16xbf16> to vector<2x1x8x16xbf16>
    %61 = vector.shape_cast %60 : vector<2x1x8x16xbf16> to vector<2x1x8x16xbf16>
    %62 = vector.broadcast %61 : vector<2x1x8x16xbf16> to vector<2x2x8x16xbf16>
    %63 = vector.shape_cast %62 : vector<2x2x8x16xbf16> to vector<4x8x16xbf16>
    %64 = vector.shape_cast %59 : vector<2x8x16xbf16> to vector<2x1x8x16xbf16>
    %65 = vector.shape_cast %64 : vector<2x1x8x16xbf16> to vector<2x1x8x16xbf16>
    %66 = vector.broadcast %65 : vector<2x1x8x16xbf16> to vector<2x2x8x16xbf16>
    %67 = vector.shape_cast %66 : vector<2x2x8x16xbf16> to vector<4x8x16xbf16>
    "tpu.trace_start"() <{level = 10 : i32, message = "hqd,hkd->hqk"}> : () -> ()
    %cst_21 = arith.constant dense<0.000000e+00> : vector<4x8x8xf32>
    %68 = tpu.matmul %44, %63, %cst_21 {dimension_numbers = #tpu.dot_dimension_numbers<[2], [2], [1], [1], [0, 0, 0, 1, 1, 1], [0], [0]>} : vector<4x8x16xbf16>, vector<4x8x16xbf16>, vector<4x8x8xf32> -> vector<4x8x8xf32>
    "tpu.trace_stop"() : () -> ()
    %69 = tpu.iota {dimensions = array<i32: 0>} : vector<8x8xi32>
    %70 = tpu.iota {dimensions = array<i32: 1>} : vector<8x8xi32>
    %71 = arith.cmpi sle, %70, %69 : vector<8x8xi32>
    %cst_22 = arith.constant 0.000000e+00 : f32
    %cst_23 = arith.constant -1.000000e+30 : f32
    %72 = vector.broadcast %cst_22 : f32 to vector<8x8xf32>
    %73 = vector.broadcast %cst_23 : f32 to vector<8x8xf32>
    %74 = arith.select %71, %72, %73 : vector<8x8xi1>, vector<8x8xf32>
    %75 = vector.shape_cast %74 : vector<8x8xf32> to vector<1x8x8xf32>
    %76 = vector.broadcast %75 : vector<1x8x8xf32> to vector<4x8x8xf32>
    %77 = arith.addf %68, %76 : vector<4x8x8xf32>
    %cst_24 = arith.constant dense<0xFF800000> : vector<4x8xf32>
    %78 = vector.multi_reduction <maximumf>, %77, %cst_24 [2] : vector<4x8x8xf32> to vector<4x8xf32>
    %79 = vector.shape_cast %78 : vector<4x8xf32> to vector<4x8x1xf32>
    %80 = vector.broadcast %79 : vector<4x8x1xf32> to vector<4x8x8xf32>
    %81 = arith.subf %77, %80 : vector<4x8x8xf32>
    %82 = math.exp %81 : vector<4x8x8xf32>
    %cst_25 = arith.constant dense<0.000000e+00> : vector<4x8xf32>
    %83 = vector.multi_reduction <add>, %82, %cst_25 [2] : vector<4x8x8xf32> to vector<4x8xf32>
    %84 = vector.shape_cast %83 : vector<4x8xf32> to vector<4x8x1xf32>
    %85 = tpu.reciprocal %84 {approx = true} : vector<4x8x1xf32> -> vector<4x8x1xf32>
    %86 = vector.broadcast %85 : vector<4x8x1xf32> to vector<4x8x8xf32>
    %87 = arith.mulf %82, %86 : vector<4x8x8xf32>
    %88 = arith.truncf %87 : vector<4x8x8xf32> to vector<4x8x8xbf16>
    "tpu.trace_start"() <{level = 10 : i32, message = "hqk,hkd->hqd"}> : () -> ()
    %cst_26 = arith.constant dense<0.000000e+00> : vector<4x8x16xf32>
    %89 = tpu.matmul %88, %67, %cst_26 {dimension_numbers = #tpu.dot_dimension_numbers<[2], [1], [1], [2], [0, 0, 0, 1, 1, 2], [0], [0]>} : vector<4x8x8xbf16>, vector<4x8x16xbf16>, vector<4x8x16xf32> -> vector<4x8x16xf32>
    "tpu.trace_stop"() : () -> ()
    %90 = arith.truncf %89 : vector<4x8x16xf32> to vector<4x8x16xbf16>
    %c0_27 = arith.constant 0 : index
    %c0_28 = arith.constant 0 : index
    %c0_29 = arith.constant 0 : index
    %91 = vector.load %arg7[%c0_27, %c0_28, %c0_29] : memref<4x16x64xbf16, #tpu.memory_space<vmem>>, vector<4x16x64xbf16>
    "tpu.trace_start"() <{level = 10 : i32, message = "hqd,hdf->hqf"}> : () -> ()
    %cst_30 = arith.constant dense<0.000000e+00> : vector<4x8x64xf32>
    %92 = tpu.matmul %90, %91, %cst_30 {dimension_numbers = #tpu.dot_dimension_numbers<[2], [1], [1], [2], [0, 0, 0, 1, 1, 2], [0], [0]>} : vector<4x8x16xbf16>, vector<4x16x64xbf16>, vector<4x8x64xf32> -> vector<4x8x64xf32>
    "tpu.trace_stop"() : () -> ()
    %cst_31 = arith.constant dense<0.000000e+00> : vector<8x64xf32>
    %93 = vector.multi_reduction <add>, %92, %cst_31 [0] : vector<4x8x64xf32> to vector<8x64xf32>
    %94 = arith.addf %1, %93 : vector<8x64xf32>
    %95 = arith.mulf %94, %94 : vector<8x64xf32>
    %cst_32 = arith.constant dense<0.000000e+00> : vector<8xf32>
    %96 = vector.multi_reduction <add>, %95, %cst_32 [1] : vector<8x64xf32> to vector<8xf32>
    %97 = vector.shape_cast %96 : vector<8xf32> to vector<8x1xf32>
    %cst_33 = arith.constant 6.400000e+01 : f32
    %98 = vector.broadcast %cst_33 : f32 to vector<8x1xf32>
    %99 = arith.divf %97, %98 : vector<8x1xf32>
    %cst_34 = arith.constant 9.99999974E-6 : f32
    %100 = vector.broadcast %cst_34 : f32 to vector<8x1xf32>
    %101 = arith.addf %99, %100 : vector<8x1xf32>
    %102 = math.rsqrt %101 : vector<8x1xf32>
    %103 = vector.broadcast %102 : vector<8x1xf32> to vector<8x64xf32>
    %104 = arith.mulf %94, %103 : vector<8x64xf32>
    %105 = arith.truncf %104 : vector<8x64xf32> to vector<8x64xbf16>
    %c0_35 = arith.constant 0 : index
    %c0_36 = arith.constant 0 : index
    %106 = vector.load %arg8[%c0_35, %c0_36] : memref<64x192xbf16, #tpu.memory_space<vmem>>, vector<64x192xbf16>
    %cst_37 = arith.constant dense<0.000000e+00> : vector<8x192xf32>
    %107 = tpu.matmul %105, %106, %cst_37 {dimension_numbers = #tpu.dot_dimension_numbers<[1], [0], [0], [1], [0, 0, 1, 1], [], []>} : vector<8x64xbf16>, vector<64x192xbf16>, vector<8x192xf32> -> vector<8x192xf32>
    %c0_38 = arith.constant 0 : index
    %c0_39 = arith.constant 0 : index
    %108 = vector.load %arg10[%c0_38, %c0_39] : memref<64x192xbf16, #tpu.memory_space<vmem>>, vector<64x192xbf16>
    %cst_40 = arith.constant dense<0.000000e+00> : vector<8x192xf32>
    %109 = tpu.matmul %105, %108, %cst_40 {dimension_numbers = #tpu.dot_dimension_numbers<[1], [0], [0], [1], [0, 0, 1, 1], [], []>} : vector<8x64xbf16>, vector<64x192xbf16>, vector<8x192xf32> -> vector<8x192xf32>
    %110 = arith.negf %107 : vector<8x192xf32>
    %111 = math.exp %110 : vector<8x192xf32>
    %cst_41 = arith.constant 1.000000e+00 : f32
    %112 = vector.broadcast %cst_41 : f32 to vector<8x192xf32>
    %113 = arith.addf %112, %111 : vector<8x192xf32>
    %114 = arith.divf %112, %113 : vector<8x192xf32>
    %115 = arith.mulf %107, %114 : vector<8x192xf32>
    %116 = arith.mulf %115, %109 : vector<8x192xf32>
    %117 = arith.truncf %116 : vector<8x192xf32> to vector<8x192xbf16>
    %c0_42 = arith.constant 0 : index
    %c0_43 = arith.constant 0 : index
    %118 = vector.load %arg9[%c0_42, %c0_43] : memref<192x64xbf16, #tpu.memory_space<vmem>>, vector<192x64xbf16>
    %cst_44 = arith.constant dense<0.000000e+00> : vector<8x64xf32>
    %119 = tpu.matmul %117, %118, %cst_44 {dimension_numbers = #tpu.dot_dimension_numbers<[1], [0], [0], [1], [0, 0, 1, 1], [], []>} : vector<8x192xbf16>, vector<192x64xbf16>, vector<8x64xf32> -> vector<8x64xf32>
    %120 = arith.addf %94, %119 : vector<8x64xf32>
    %c0_45 = arith.constant 0 : index
    %c0_46 = arith.constant 0 : index
    %c0_47 = arith.constant 0 : index
    %121 = vector.load %arg11[%c0_45, %c0_46, %c0_47] : memref<1x8x64xf32, #tpu.memory_space<vmem>>, vector<1x8x64xf32>
    %122 = vector.shape_cast %121 : vector<1x8x64xf32> to vector<8x64xf32>
    %123 = vector.shape_cast %120 : vector<8x64xf32> to vector<1x8x64xf32>
    tpu.vector_store %arg11[%c0_45, %c0_46, %c0_47], %123 {strides = array<i32>} : memref<1x8x64xf32, #tpu.memory_space<vmem>>, vector<1x8x64xf32>,
    return
  }
  func.func @transform_0(%arg0: i32) -> (i32, i32, i32) {
    %c0_i32 = arith.constant 0 : i32
    %c0_i32_0 = arith.constant 0 : i32
    %c0_i32_1 = arith.constant 0 : i32
    return %arg0, %c0_i32, %c0_i32_0 : i32, i32, i32
  }
  func.func @transform_1(%arg0: i32) -> (i32, i32) {
    %c0_i32 = arith.constant 0 : i32
    %c0_i32_0 = arith.constant 0 : i32
    %c0_i32_1 = arith.constant 0 : i32
    return %c0_i32, %c0_i32_0 : i32, i32
  }
  func.func @transform_2(%arg0: i32) -> (i32, i32) {
    %c0_i32 = arith.constant 0 : i32
    %c0_i32_0 = arith.constant 0 : i32
    %c0_i32_1 = arith.constant 0 : i32
    return %c0_i32, %c0_i32_0 : i32, i32
  }
  func.func @transform_3(%arg0: i32) -> (i32, i32, i32) {
    %c0_i32 = arith.constant 0 : i32
    %c0_i32_0 = arith.constant 0 : i32
    %c0_i32_1 = arith.constant 0 : i32
    %c0_i32_2 = arith.constant 0 : i32
    return %c0_i32, %c0_i32_0, %c0_i32_1 : i32, i32, i32
  }
  func.func @transform_4(%arg0: i32) -> (i32, i32, i32) {
    %c0_i32 = arith.constant 0 : i32
    %c0_i32_0 = arith.constant 0 : i32
    %c0_i32_1 = arith.constant 0 : i32
    %c0_i32_2 = arith.constant 0 : i32
    return %c0_i32, %c0_i32_0, %c0_i32_1 : i32, i32, i32
  }
  func.func @transform_5(%arg0: i32) -> (i32, i32, i32) {
    %c0_i32 = arith.constant 0 : i32
    %c0_i32_0 = arith.constant 0 : i32
    %c0_i32_1 = arith.constant 0 : i32
    %c0_i32_2 = arith.constant 0 : i32
    return %c0_i32, %c0_i32_0, %c0_i32_1 : i32, i32, i32
  }
  func.func @transform_6(%arg0: i32) -> (i32, i32, i32) {
    %c0_i32 = arith.constant 0 : i32
    %c0_i32_0 = arith.constant 0 : i32
    %c0_i32_1 = arith.constant 0 : i32
    %c0_i32_2 = arith.constant 0 : i32
    return %c0_i32, %c0_i32_0, %c0_i32_1 : i32, i32, i32
  }
  func.func @transform_7(%arg0: i32) -> (i32, i32) {
    %c0_i32 = arith.constant 0 : i32
    %c0_i32_0 = arith.constant 0 : i32
    %c0_i32_1 = arith.constant 0 : i32
    return %c0_i32, %c0_i32_0 : i32, i32
  }
  func.func @transform_8(%arg0: i32) -> (i32, i32) {
    %c0_i32 = arith.constant 0 : i32
    %c0_i32_0 = arith.constant 0 : i32
    %c0_i32_1 = arith.constant 0 : i32
    return %c0_i32, %c0_i32_0 : i32, i32
  }
  func.func @transform_9(%arg0: i32) -> (i32, i32) {
    %c0_i32 = arith.constant 0 : i32
    %c0_i32_0 = arith.constant 0 : i32
    %c0_i32_1 = arith.constant 0 : i32
    return %c0_i32, %c0_i32_0 : i32, i32
  }
  func.func @transform_10(%arg0: i32) -> (i32, i32, i32) {
    %c0_i32 = arith.constant 0 : i32
    %c0_i32_0 = arith.constant 0 : i32
    %c0_i32_1 = arith.constant 0 : i32
    return %arg0, %c0_i32, %c0_i32_0 : i32, i32, i32
  }
}

</mosaic_0001>

<bundles_post_ra>
// kernel: tpu_custom_call.1
= control target key start
LH: loop header
LB: loop body
LE: loop exit
PB: predicated region body
PF: predicated region fallthrough
CT: control target
= control target key end

     0   :  { %15 = vsyncpa [#allocation3], 0  ;;  %s2580_s0 = inlined_call_operand.vmem [shape: f32[2,8,64], index: 0, kind: input, shape index: {}]   ;;  %s2581_s1 = inlined_call_operand.vmem [shape: f32[8,8], index: 1, kind: input, shape index: {}]   ;;  %s2582_s2 = inlined_call_operand.vmem [shape: f32[8,8], index: 2, kind: input, shape index: {}]   ;;  %s2583_s3 = inlined_call_operand.vmem [shape: bf16[4,64,16], index: 3, kind: input, shape index: {}]   ;;  %s2584_s4 = inlined_call_operand.vmem [shape: bf16[2,64,16], index: 4, kind: input, shape index: {}]   ;;  %s2585_s5 = inlined_call_operand.vmem [shape: bf16[2,64,16], index: 5, kind: input, shape index: {}]   ;;  %s2586_s6 = inlined_call_operand.vmem [shape: bf16[4,16,64], index: 6, kind: input, shape index: {}]   ;;  %s2587_s7 = inlined_call_operand.vmem [shape: bf16[64,192], index: 7, kind: input, shape index: {}]   ;;  %s2588_s8 = inlined_call_operand.vmem [shape: bf16[192,64], index: 8, kind: input, shape index: {}]   ;;  %s2589_s9 = inlined_call_operand.vmem [shape: bf16[64,192], index: 9, kind: input, shape index: {}]   ;;  %s2590_s10 = inlined_call_operand.hbm [shape: f32[2,8,64], index: 10, kind: output, shape index: {}]  }
   0x1   :  { %17 = vsyncpa [#allocation3 + $0x1], 0  ;;  %s2131_s13 = smov 0   ;;  %s2133_s14 = smov 0  }
   0x2   :  { %s2135_s15 = smov 0   ;;  %s2137_s16 = smov 0  }
   0x3 LB: > { %s2152_s17 = sadd.s32 4294967295, %s2070_s16   ;;  %s1578_s18 = sadd.s32 4294967294, %s2070_s16   ;;  %s2070_s16 = sphi %s2137_s16, %s2596_s16   ;;  %s2066_s15 = sphi %s2135_s15, %s2595_s15   ;;  %s2062_s14 = sphi %s2133_s14, %s2594_s14   ;;  %s2058_s13 = sphi %s2131_s13, %s2593_s13  }
   0x4   : > { %s2156_s19 = sadd.s32 1, %s2070_s16   ;;  %s245_s20 = sadd.s32 1, %s2066_s15 }
   0x5   : > { %s242_s21 = ssub.s32 %s2070_s16, %s2156_s19  ;;  %p255_p0 = scmp.ne.s32.totalorder %s2066_s15, %s2062_s14 }
   0x6   : > { %p243_p1 = scmp.eq.s32.totalorder %s242_s21, 0  ;;  %p256_p2 = scmp.eq.s32.totalorder %s2152_s17, 1 }
   0x7   : > { %p261_p3 = scmp.ne.s32.totalorder %s2062_s14, %s2058_s13  ;;  %p262_p4 = scmp.eq.s32.totalorder %s1578_s18, 1 }
   0x8   : > { %s2167_s22 = scalar_select %p243_p1, %s2066_s15, %s245_s20  }
   0x9   : > { %p2169_p5 = por %p256_p2, %p255_p0  ;;  %p2173_p6 = por %p262_p4, %p261_p3 }
   0xa   : > { %p1581_p7 = scmp.ge.s32.totalorder %s2070_s16, 1  ;;  %p314_p8 = scmp.lt.s32.totalorder %s2070_s16, 3 }
   0xc   : > { %p315_p9 = pnand %p1581_p7, %p314_p8 }
   0xd   : > { %p351_p10 = scmp.lt.s32.totalorder (!%p315_p9), %s2152_s17, 1  ;;  %s2073_s20 = smov (!%p315_p9), 8  }
   0xe   : > { %318 = sbr.rel (%p315_p9) target bundleno = 1547 (0x60b), region = 60  ;;  %s2074_s21 = smov (!%p315_p9), 120  }
   0xf   : > { %s348_s12 = sand.u32 (!%p315_p9), 1, %s2062_s14  }
  0x10   : > { %s1582_s18 = sshll.u32 (!%p315_p9), %s348_s12, 3  ;;  %s1504_s30 = scalar_lea.sflag (!%p315_p9), [#allocation3], %s348_s12 }
  0x11   : > { %s350_s27 = scalar_lea.vmem (!%p315_p9), [#allocation2], %s1582_s18  ;;  %s2028_s18 = scalar_lea.hbm (!%p315_p9), %s2590_s10, 16 }
  0x12   : > { %s1516_s28 = sshll.u32 (!%p315_p9), %s350_s27, 4  ;;  %s1517_s28 = int_to_ptr.vmem [resolvable:$true] %s1516_s28 }
  0x13   : > { %s352_s25 = scalar_select %p351_p10, %s2152_s17, 1  ;;  %vm360_vm0 = vcmask 523264   ;;  %v2072_v3 = vmov 64.0   ;;  %v1874_v4 = vld [vmem:[%s2583_s3 + $0x18] sm:$0xff]  ;;  %v1873_v10 = vld [vmem:[%s2583_s3 + $0x10] sm:$0xff]  ;;  %v1872_v15 = vld [vmem:[%s2583_s3 + $0x8] sm:$0xff] }
  0x14   : > { %1978 = vrcp.f32 %v2072_v3  ;;  %v1878_v5 = vld [vmem:[%s2583_s3 + $0x38] sm:$0xff]  ;;  %448 = vmatpush.bf16.msra.mxu2 %v1874_v4  ;;  %v1877_v11 = vld [vmem:[%s2583_s3 + $0x30] sm:$0xff]  ;;  %v1876_v16 = vld [vmem:[%s2583_s3 + $0x28] sm:$0xff]  ;;  %vm812_vm5 = vcmask 64512   ;;  %vm865_vm6 = vcmask 130048   ;;  %vm987_vm7 = vcmask 1043456  }
  0x15   : > { %s1583_s26 = sshll.u32 %s352_s25, 3  ;;  %v1886_v6 = vld [vmem:[%s2583_s3 + $0x78] sm:$0xff]  ;;  %485 = vmatpush.bf16.msra.mxu1 %v1878_v5  ;;  %v1885_v12 = vld [vmem:[%s2583_s3 + $0x70] sm:$0xff]  ;;  %v1884_v17 = vld [vmem:[%s2583_s3 + $0x68] sm:$0xff] }
  0x16   : > { %s354_s29 = scalar_lea.vmem %s2580_s0, %s1583_s26  ;;  %v1890_v8 = vld [vmem:[%s2584_s4 + $0x18] sm:$0xff]  ;;  %559 = vmatpush.bf16.msra.mxu3 %v1886_v6  ;;  %v1889_v13 = vld [vmem:[%s2584_s4 + $0x10] sm:$0xff]  ;;  %v1888_v18 = vld [vmem:[%s2584_s4 + $0x8] sm:$0xff] }
  0x17   : > { %v2184_v0 = vld [vmem:[%s354_s29] sm:$0xff]  ;;  %612 = vmatpush.bf16.msra.mxu0 %v1890_v8  ;;  %v1882_v25 = vld [vmem:[%s2583_s3 + $0x58] sm:$0xff]  ;;  %v1881_v28 = vld [vmem:[%s2583_s3 + $0x50] sm:$0xff] }
  0x18   : > { %v359_v1 = vmul.f32 %v2184_v0, %v2184_v0  ;;  %449 = vmatpush.bf16.msra.mxu2 %v1873_v10  ;;  %v1871_v20 = vld [vmem:[%s2583_s3] sm:$0xff]  ;;  %v1894_v26 = vld [vmem:[%s2584_s4 + $0x38] sm:$0xff]  ;;  %v1893_v29 = vld [vmem:[%s2584_s4 + $0x30] sm:$0xff] }
  0x19   : > { %486 = vmatpush.bf16.msra.mxu1 %v1877_v11  ;;  %v1875_v21 = vld [vmem:[%s2583_s3 + $0x20] sm:$0xff]  ;;  %v1902_v27 = vld [vmem:[%s2585_s5 + $0x38] sm:$0xff]  ;;  %v1901_v31 = vld [vmem:[%s2585_s5 + $0x30] sm:$0xff] }
  0x1a   : > { %v361_v2 = vsel %vm360_vm0, %v359_v1, 0.0  ;;  %v1979_v7 = vpop.eup %1978  ;;  %560 = vmatpush.bf16.msra.mxu3 %v1885_v12  ;;  %v1883_v22 = vld [vmem:[%s2583_s3 + $0x60] sm:$0xff]  ;;  %v1880_v36 = vld [vmem:[%s2583_s3 + $0x48] sm:$0xff]  ;;  %v1898_v52 = vld [vmem:[%s2585_s5 + $0x18] sm:$0xff] }
  0x1b   : > { %362 = vadd.xlane.f32.xlu0 %v361_v2  ;;  %v365_v9 = vmul.f32 64.0, %v1979_v7  ;;  %613 = vmatpush.bf16.msra.mxu0 %v1889_v13  ;;  %v1887_v23 = vld [vmem:[%s2584_s4] sm:$0xff]  ;;  %vm369_vm1 = vweird.f32 %v1979_v7  ;;  %v1892_v37 = vld [vmem:[%s2584_s4 + $0x28] sm:$0xff]  ;;  %v1897_v53 = vld [vmem:[%s2585_s5 + $0x10] sm:$0xff] }
  0x1c   : > { %450 = vmatpush.bf16.msra.mxu2 %v1872_v15  ;;  %v2260_v32 = vld [vmem:[%s2581_s1] sm:$0xff]  ;;  %v1900_v38 = vld [vmem:[%s2585_s5 + $0x28] sm:$0xff] }
  0x1d   : > { %v366_v14 = vsub.f32 1.0, %v365_v9  ;;  %487 = vmatpush.bf16.msra.mxu1 %v1876_v16  ;;  %v2265_v33 = vld [vmem:[%s2582_s2] sm:$0xff]  ;;  %781 = vrot.lane.b32.xlu1 %v2260_v32, %s2073_s20  ;;  %v1896_v54 = vld [vmem:[%s2585_s5 + $0x8] sm:$0xff] }
  0x1e   : > { %561 = vmatpush.bf16.msra.mxu3 %v1884_v17  ;;  %v1879_v40 = vld [vmem:[%s2583_s3 + $0x40] sm:$0xff] }
  0x1f   : > { %614 = vmatpush.bf16.msra.mxu0 %v1888_v18  ;;  %v367_v19 = vmul.f32 %v1979_v7, %v366_v14  ;;  %v1891_v41 = vld [vmem:[%s2584_s4 + $0x20] sm:$0xff] }
  0x20   : > { %451 = vmatpush.bf16.msra.mxu2 %v1871_v20  ;;  %v1899_v42 = vld [vmem:[%s2585_s5 + $0x20] sm:$0xff] }
  0x21   : > { %488 = vmatpush.bf16.msra.mxu1 %v1875_v21  ;;  %v368_v24 = vadd.f32 %v1979_v7, %v367_v19  ;;  %v1895_v55 = vld [vmem:[%s2585_s5] sm:$0xff] }
  0x22   : > { %562 = vmatpush.bf16.msra.mxu3 %v1883_v22 }
  0x23   : > { %615 = vmatpush.bf16.msra.mxu0 %v1887_v23  ;;  %v2252_v30 = vsel %vm369_vm1, %v1979_v7, %v368_v24 }
  0x24   : > { %522 = vmatpush.bf16.msrb.mxu2 %v1882_v25 }
  0x25   : > { %649 = vmatpush.bf16.msrb.mxu1 %v1894_v26 }
  0x26   : > { %739 = vmatpush.bf16.msrb.mxu3 %v1902_v27 }
  0x28   : > { %523 = vmatpush.bf16.msrb.mxu2 %v1881_v28 }
  0x29   : > { %650 = vmatpush.bf16.msrb.mxu1 %v1893_v29 }
  0x2a   : > { %740 = vmatpush.bf16.msrb.mxu3 %v1901_v31 }
  0x2c   : > { %524 = vmatpush.bf16.msrb.mxu2 %v1880_v36 }
  0x2d   : > { %651 = vmatpush.bf16.msrb.mxu1 %v1892_v37 }
  0x2e   : > { %741 = vmatpush.bf16.msrb.mxu3 %v1900_v38 }
  0x2f   : > { %753 = vrot.lane.b32.xlu0 %v2265_v33, %s2073_s20 }
  0x30   : > { %525 = vmatpush.bf16.msrb.mxu2 %v1879_v40 }
  0x31   : > { %652 = vmatpush.bf16.msrb.mxu1 %v1891_v41 }
  0x32   : > { %742 = vmatpush.bf16.msrb.mxu3 %v1899_v42 }
  0x8e   : > { %v363_v34 = vpop.xlane.xlu0 %362 }
  0x8f   : > { %v371_v35 = vmul.f32 %v2252_v30, %v363_v34  ;;  %v2335_v24 = vpop.permute.xlu1 %781 }
  0x91   : > { %v372_v39 = vadd.f32 1e-05, %v371_v35 }
  0x93   : > { %1980 = vrsqrt.f32 %v372_v39  ;;  %vm379_vm3 = vweird.f32 %v372_v39 }
  0x99   : > { %v1981_v43 = vpop.eup %1980 }
  0x9a   : > { %v374_v44 = vmul.f32 %v1981_v43, %v372_v39  ;;  %vm380_vm2 = vweird.f32 %v1981_v43 }
  0x9b   : > { %vm381_vm4 = vmor %vm379_vm3, %vm380_vm2 }
  0x9c   : > { %v375_v45 = vmul.f32 %v1981_v43, %v374_v44 }
  0x9e   : > { %v376_v46 = vmul.f32 0.5, %v375_v45 }
  0xa0   : > { %v377_v47 = vsub.f32 1.5, %v376_v46 }
  0xa1   : > { %v754_v60 = vpop.permute.xlu0 %753 }
  0xa2   : > { %v378_v48 = vmul.f32 %v1981_v43, %v377_v47 }
  0xa4   : > { %v382_v49 = vsel %vm381_vm4, %v1981_v43, %v378_v48 }
  0xa5   : > { %v383_v50 = vmul.f32 %v382_v49, %v2184_v0 }
  0xa7   : > { %v384_v51 = vpack.c.bf16 %v383_v50, %v383_v50 }
  0xa9   : > { %1600 = vmatmul.msk.bf16.vlgmr.msra.gmra.mxu2 %vm360_vm0, %v384_v51  ;;  %1617 = vmatmul.msk.bf16.vlgmr.msra.gmra.mxu1 %vm360_vm0, %v384_v51 }
  0xaa   : > { %1651 = vmatmul.msk.bf16.vlgmr.msra.gmra.mxu3 %vm360_vm0, %v384_v51  ;;  %1668 = vmatmul.msk.bf16.vlgmr.msra.gmra.mxu0 %vm360_vm0, %v384_v51 }
  0xab   : > { %702 = vmatpush.bf16.msra.mxu2 %v1898_v52 }
  0xaf   : > { %703 = vmatpush.bf16.msra.mxu2 %v1897_v53 }
  0xb3   : > { %704 = vmatpush.bf16.msra.mxu2 %v1896_v54 }
  0xb7   : > { %705 = vmatpush.bf16.msra.mxu2 %v1895_v55 }
  0xb9   : > { %1634 = vmatmul.msk.bf16.vlgmr.msrb.gmra.mxu2 %vm360_vm0, %v384_v51  ;;  %1685 = vmatmul.msk.bf16.vlgmr.msrb.gmra.mxu1 %vm360_vm0, %v384_v51 }
  0xba   : > { %1719 = vmatmul.msk.bf16.vlgmr.msrb.gmra.mxu3 %vm360_vm0, %v384_v51 }
  0xc9   : > { %1702 = vmatmul.msk.bf16.vlgmr.msra.gmra.mxu2 %vm360_vm0, %v384_v51 }
 0x126   : > { %v2311_v56 = vpop.f32.mrf.mxu1 }
 0x127   : > { %v617_v57 = vpop.f32.mrf.mxu0  ;;  %v757_v19 = vmul.f32 %v754_v60, %v2311_v56  ;;  %v789_v20 = vmul.f32 %v2311_v56, %v2265_v33 }
 0x128   : > { %v841_v58 = vmul.f32 %v617_v57, %v2265_v33  ;;  %v827_v16 = vmul.f32 %v754_v60, %v617_v57  ;;  %v839_v27 = vmul.f32 %v2335_v24, %v617_v57  ;;  %v825_v28 = vmul.f32 %v617_v57, %v2260_v32 }
 0x12a   : > { %845 = vrot.lane.b32.xlu0 %v841_v58, %s2073_s20 }
 0x12c   : > { %v2315_v59 = vpop.f32.mrf.mxu2 }
 0x12d   : > { %v2317_v61 = vpop.f32.mrf.mxu3  ;;  %v788_v3 = vmul.f32 %v2315_v59, %v2265_v33  ;;  %v756_v17 = vmul.f32 %v754_v60, %v2315_v59 }
 0x12e   : > { %v492_v62 = vpop.f32.mrf.mxu1  ;;  %v791_v63 = vmul.f32 %v2317_v61, %v2265_v33  ;;  %v759_v1 = vmul.f32 %v754_v60, %v2317_v61  ;;  %v787_v41 = vmul.f32 %v2335_v24, %v2317_v61  ;;  %v751_v44 = vmul.f32 %v2317_v61, %v2260_v32 }
 0x12f   : > { %v619_v2 = vpop.f32.mrf.mxu0 }
 0x130   : > { %802 = vrot.lane.b32.xlu1 %v791_v63, %s2073_s20  ;;  %770 = vrot.lane.b32.xlu2 %v759_v1, %s2074_s21 }
 0x132   : > { %796 = vrot.lane.b32.xlu0 %v788_v3, %s2073_s20 }
 0x134   : > { %v455_v4 = vpop.f32.mrf.mxu2 }
 0x135   : > { %v566_v5 = vpop.f32.mrf.mxu3 }
 0x136   : > { %v654_v6 = vpop.f32.mrf.mxu1  ;;  %v784_v5 = vmul.f32 %v2335_v24, %v2315_v59 }
 0x137   : > { %v828_v7 = vmul.f32 %v754_v60, %v654_v6  ;;  %v842_v8 = vmul.f32 %v654_v6, %v2265_v33  ;;  %v840_v40 = vmul.f32 %v2335_v24, %v654_v6  ;;  %v826_v42 = vmul.f32 %v654_v6, %v2260_v32 }
 0x138   : > { %v748_v6 = vmul.f32 %v2315_v59, %v2260_v32 }
 0x139   : > { %833 = vrot.lane.b32.xlu1 %v828_v7, %s2074_s21  ;;  %847 = vrot.lane.b32.xlu2 %v842_v8, %s2073_s20 }
 0x13c   : > { %v527_v9 = vpop.f32.mrf.mxu2 }
 0x13d   : > { %v744_v10 = vpop.f32.mrf.mxu3  ;;  %v790_v12 = vmul.f32 %v527_v9, %v2265_v33  ;;  %v758_v13 = vmul.f32 %v754_v60, %v527_v9  ;;  %v750_v55 = vmul.f32 %v527_v9, %v2260_v32  ;;  %v786_v57 = vmul.f32 %v2335_v24, %v527_v9 }
 0x13e   : > { %v656_v11 = vpop.f32.mrf.mxu1  ;;  %v858_v48 = vpack.c.bf16 %v744_v10, %v744_v10 }
 0x140   : > { %v1024_v54 = vsel %vm987_vm7, %v858_v48, 0 }
 0x141   : > { %800 = vrot.lane.b32.xlu1 %v790_v12, %s2073_s20  ;;  %768 = vrot.lane.b32.xlu2 %v758_v13, %s2074_s21 }
 0x144   : > { %v529_v14 = vpop.f32.mrf.mxu2 }
 0x145   : > { %v746_v15 = vpop.f32.mrf.mxu3  ;;  %v749_v14 = vmul.f32 %v2311_v56, %v2260_v32 }
 0x146   : > { %v785_v15 = vmul.f32 %v2335_v24, %v2311_v56 }
 0x149   : > { %831 = vrot.lane.b32.xlu2 %v827_v16, %s2074_s21  ;;  %764 = vrot.lane.b32.xlu1 %v756_v17, %s2074_s21 }
 0x14c   : > { %v707_v18 = vpop.f32.mrf.mxu2 }
 0x14d   : > { %v857_v33 = vpack.c.bf16 %v707_v18, %v707_v18 }
 0x14f   : > { %v989_v39 = vsel %vm987_vm7, %v857_v33, 0 }
 0x151   : > { %766 = vrot.lane.b32.xlu2 %v757_v19, %s2074_s21  ;;  %798 = vrot.lane.b32.xlu1 %v789_v20, %s2073_s20  ;;  %s1868_s21 = sshll.u32 %s2152_s17, 3 }
 0x152   : > { %s1514_s26 = scalar_lea.hbm %s2590_s10, %s1868_s21 }
 0x153   : > { %s1518_s29 = sshll.u32 %s1514_s26, 4  ;;  %s1519_s29 = int_to_ptr.hbm [resolvable:$true] %s1518_s29 }
 0x154   : > { %v709_v21 = vpop.f32.mrf.mxu2  ;;  %s2022_s11 = sshra.s32 %s1519_s29, 4  ;;  %s2023_s11 = int_to_ptr.hbm [resolvable:$true] %s2022_s11 }
 0x155   : > { %v859_v21 = vlaneseq  ;;  %s2024_s17 = scalar_lea.hbm %s2023_s11, 8  ;;  %p2029_p0 = scmp.lt.s32.totalorder %s2023_s11, %s2590_s10 }
 0x156   : > { %p2025_p11 = scmp.ne.s32.totalorder %s2023_s11, %s2024_s17  ;;  %p2030_p1 = scmp.lt.s32.totalorder %s2028_s18, %s2024_s17 }
 0x158   : > { %p2026_p12 = pnand %p2025_p11, %p2169_p5  ;;  %p2031_p2 = por %p2030_p1, %p2029_p0 }
 0x15a   : > { %p2027_p13 = pneg %p2026_p12 }
 0x15c   : > { %p2032_p3 = pnand %p2031_p2, %p2027_p13 }
 0x18a   : > { %v771_v22 = vpop.permute.xlu2 %770 }
 0x18b   : > { %v779_v49 = vsub.f32 %v751_v44, %v771_v22  ;;  %v860_v22 = vshrl.u32 %v859_v21, 7 }
 0x193   : > { %v848_v23 = vpop.permute.xlu2 %847 }
 0x194   : > { %v852_v45 = vadd.f32 %v848_v23, %v840_v40  ;;  %v862_v23 = vand.u32 127, %v859_v21 }
 0x196   : > { %vm863_vm8 = vcmp.le.s32.totalorder %v862_v23, %v860_v22 }
 0x19b   : > { %v769_v25 = vpop.permute.xlu2 %768 }
 0x19c   : > { %v846_v26 = vpop.permute.xlu0 %845  ;;  %v778_v61 = vsub.f32 %v750_v55, %v769_v25  ;;  %v2075_v25 = vmov -1e+30  }
 0x19d   : > { %v851_v34 = vadd.f32 %v846_v26, %v839_v27  ;;  %v864_v32 = vsel %vm863_vm8, 0.0, %v2075_v25 }
 0x1a2   : > { %v803_v29 = vpop.permute.xlu1 %802 }
 0x1a3   : > { %v832_v31 = vpop.permute.xlu2 %831  ;;  %v811_v46 = vadd.f32 %v803_v29, %v787_v41 }
 0x1a4   : > { %v837_v35 = vsub.f32 %v825_v28, %v832_v31  ;;  %v797_v3 = vpop.permute.xlu0 %796 }
 0x1a5   : > { %v816_v52 = vsel %vm812_vm5, %v779_v49, %v811_v46  ;;  %v808_v8 = vadd.f32 %v797_v3, %v784_v5 }
 0x1a6   : > { %v853_v36 = vsel %vm812_vm5, %v837_v35, %v851_v34  ;;  %v820_v58 = vmul.f32 0.25, %v816_v52 }
 0x1a7   : > { %v855_v37 = vpack.c.bf16 %v853_v36, %v853_v36 }
 0x1a8   : > { %v824_v1 = vpack.c.bf16 %v820_v58, %v820_v58 }
 0x1a9   : > { %v870_v38 = vsel %vm865_vm6, %v855_v37, 0 }
 0x1aa   : > { %879 = vmatpush.bf16.xpose.msrb.mxu0 %v870_v38  ;;  %895 = vmatpush.bf16.xpose.msra.mxu1 %v870_v38 }
 0x1ab   : > { %v834_v43 = vpop.permute.xlu1 %833  ;;  %v767_v12 = vpop.permute.xlu2 %766 }
 0x1ac   : > { %v838_v47 = vsub.f32 %v826_v42, %v834_v43  ;;  %v777_v59 = vsub.f32 %v749_v14, %v767_v12 }
 0x1ae   : > { %v854_v50 = vsel %vm812_vm5, %v838_v47, %v852_v45 }
 0x1af   : > { %v856_v51 = vpack.c.bf16 %v854_v50, %v854_v50 }
 0x1b1   : > { %v905_v53 = vsel %vm865_vm6, %v856_v51, 0 }
 0x1b2   : > { %998 = vmatpush.bf16.msra.mxu0 %v989_v39  ;;  %1014 = vmatpush.bf16.msrb.mxu1 %v989_v39 }
 0x1b3   : > { %914 = vmatpush.bf16.xpose.msrb.mxu2 %v905_v53  ;;  %930 = vmatpush.bf16.xpose.msra.mxu3 %v905_v53  ;;  %v801_v60 = vpop.permute.xlu1 %800 }
 0x1b4   : > { %v810_v62 = vadd.f32 %v801_v60, %v786_v57 }
 0x1b6   : > { %v815_v63 = vsel %vm812_vm5, %v778_v61, %v810_v62 }
 0x1b7   : > { %v819_v2 = vmul.f32 0.25, %v815_v63 }
 0x1b9   : > { %v823_v4 = vpack.c.bf16 %v819_v2, %v819_v2 }
 0x1ba   : > { %1723 = vmatmul.msk.bf16.vlgmr.msra.gmra.mxu3 %vm865_vm6, %v824_v1  ;;  %v1905_v1 = vld [vmem:[%s2586_s6 + $0x10] sm:$0xff] }
 0x1bb   : > { %1033 = vmatpush.bf16.msra.mxu2 %v1024_v54  ;;  %1049 = vmatpush.bf16.msrb.mxu3 %v1024_v54  ;;  %v765_v7 = vpop.permute.xlu1 %764 }
 0x1bc   : > { %1722 = vmatmul.msk.bf16.vlgmr.msrb.gmra.mxu2 %vm865_vm6, %v823_v4  ;;  %v776_v9 = vsub.f32 %v748_v6, %v765_v7 }
 0x1be   : > { %v813_v10 = vsel %vm812_vm5, %v776_v9, %v808_v8 }
 0x1bf   : > { %v817_v11 = vmul.f32 0.25, %v813_v10  ;;  %1127 = vmatpush.bf16.msrb.mxu2 %v1905_v1  ;;  %v1912_v1 = vld [vmem:[%s2587_s7 + $0x24] sm:$0xf0] }
 0x1c1   : > { %v821_v13 = vpack.c.bf16 %v817_v11, %v817_v11 }
 0x1c3   : > { %v799_v16 = vpop.permute.xlu1 %798  ;;  %1720 = vmatmul.msk.bf16.vlgmr.msrb.gmra.mxu0 %vm865_vm6, %v821_v13 }
 0x1c4   : > { %v809_v17 = vadd.f32 %v799_v16, %v785_v15 }
 0x1c6   : > { %v814_v18 = vsel %vm812_vm5, %v777_v59, %v809_v17  ;;  %v1903_v17 = vld [vmem:[%s2586_s6] sm:$0xff] }
 0x1c7   : > { %v818_v19 = vmul.f32 0.25, %v814_v18  ;;  %1083 = vmatpush.bf16.msrb.mxu0 %v1903_v17  ;;  %v1906_v18 = vld [vmem:[%s2586_s6 + $0x18] sm:$0xff] }
 0x1c8   : > { %1149 = vmatpush.bf16.msra.mxu3 %v1906_v18  ;;  %v1918_v17 = vld [vmem:[%s2589_s9 + $0x14] sm:$0xf0] }
 0x1c9   : > { %v822_v20 = vpack.c.bf16 %v818_v19, %v818_v19  ;;  %v1904_v19 = vld [vmem:[%s2586_s6 + $0x8] sm:$0xff] }
 0x1cb   : > { %1721 = vmatmul.msk.bf16.vlgmr.msra.gmra.mxu1 %vm865_vm6, %v822_v20 }
 0x1cc   : > { %1105 = vmatpush.bf16.msra.mxu1 %v1904_v19 }
 0x23d   : > { %v932_v26 = vpop.f32.mrf.mxu3 }
 0x23e   : > { %v933_v27 = vadd.f32 %v932_v26, %v864_v32 }
 0x23f   : > { %v916_v56 = vpop.f32.mrf.mxu2 }
 0x240   : > { %v917_v24 = vadd.f32 %v916_v56, %v864_v32  ;;  %v945_v28 = vsel %vm812_vm5, %v933_v27, -inf  ;;  %v881_v29 = vpop.f32.mrf.mxu0 }
 0x241   : > { %946 = vmax.xlane.f32.xlu0 %v945_v28  ;;  %v882_v31 = vadd.f32 %v881_v29, %v864_v32 }
 0x242   : > { %v942_v34 = vsel %vm812_vm5, %v917_v24, -inf }
 0x243   : > { %943 = vmax.xlane.f32.xlu2 %v942_v34  ;;  %v936_v35 = vsel %vm812_vm5, %v882_v31, -inf }
 0x244   : > { %937 = vmax.xlane.f32.xlu1 %v936_v35 }
 0x245   : > { %v934_v33 = vpop.f32.mrf.mxu3 }
 0x247   : > { %v918_v36 = vpop.f32.mrf.mxu2 }
 0x248   : > { %v883_v37 = vpop.f32.mrf.mxu0  ;;  %v897_v38 = vpop.f32.mrf.mxu1 }
 0x249   : > { %v898_v39 = vadd.f32 %v897_v38, %v864_v32 }
 0x24b   : > { %v939_v40 = vsel %vm812_vm5, %v898_v39, -inf }
 0x24c   : > { %940 = vmax.xlane.f32.xlu2 %v939_v40 }
 0x250   : > { %v899_v41 = vpop.f32.mrf.mxu1 }
 0x2b4   : > { %v947_v42 = vpop.xlane.xlu0 %946 }
 0x2b5   : > { %v951_v43 = vsub.f32 %v933_v27, %v947_v42 }
 0x2b6   : > { %v944_v44 = vpop.xlane.xlu2 %943 }
 0x2b7   : > { %v958_v45 = vmul.f32 1.442695, %v951_v43  ;;  %v950_v46 = vsub.f32 %v917_v24, %v944_v44  ;;  %v938_v47 = vpop.xlane.xlu1 %937 }
 0x2b8   : > { %v948_v49 = vsub.f32 %v882_v31, %v938_v47 }
 0x2b9   : > { %1982 = vpow2.f32 %v958_v45  ;;  %v956_v48 = vmul.f32 1.442695, %v950_v46 }
 0x2ba   : > { %v952_v50 = vmul.f32 1.442695, %v948_v49 }
 0x2bb   : > { %1984 = vpow2.f32 %v956_v48 }
 0x2bc   : > { %1986 = vpow2.f32 %v952_v50  ;;  %v1774_v50 = vld [vmem:[%s2587_s7 + $0x30] sm:$0xf] }
 0x2bf   : > { %v1983_v51 = vpop.eup %1982  ;;  %v941_v52 = vpop.xlane.xlu2 %940 }
 0x2c0   : > { %v969_v53 = vsel %vm812_vm5, %v1983_v51, 0.0  ;;  %v949_v55 = vsub.f32 %v898_v39, %v941_v52 }
 0x2c1   : > { %v1985_v54 = vpop.eup %1984  ;;  %970 = vadd.xlane.f32.xlu2 %v969_v53  ;;  %v1776_v53 = vld [vmem:[%s2587_s7 + $0x38] sm:$0xf0] }
 0x2c2   : > { %v966_v57 = vsel %vm812_vm5, %v1985_v54, 0.0  ;;  %v1987_v58 = vpop.eup %1986  ;;  %v954_v60 = vmul.f32 1.442695, %v949_v55  ;;  %v1922_v55 = vld [vmem:[%s2589_s9 + $0x34] sm:$0xf0] }
 0x2c3   : > { %967 = vadd.xlane.f32.xlu0 %v966_v57  ;;  %v960_v61 = vsel %vm812_vm5, %v1987_v58, 0.0 }
 0x2c4   : > { %1988 = vpow2.f32 %v954_v60  ;;  %961 = vadd.xlane.f32.xlu1 %v960_v61  ;;  %v1921_v60 = vld [vmem:[%s2589_s9 + $0x34] sm:$0xf]  ;;  %v1810_v61 = vld [vmem:[%s2589_s9 + $0x38] sm:$0xf0] }
 0x2ca   : > { %v1989_v62 = vpop.eup %1988 }
 0x2cb   : > { %v963_v63 = vsel %vm812_vm5, %v1989_v62, 0.0 }
 0x2cc   : > { %964 = vadd.xlane.f32.xlu0 %v963_v63  ;;  %v1766_v63 = vld [vmem:[%s2587_s7 + $0x20] sm:$0xf] }
 0x334   : > { %v971_v2 = vpop.xlane.xlu2 %970 }
 0x335   : > { %1990 = vrcp.f32 %v971_v2  ;;  %v1911_v2 = vld [vmem:[%s2587_s7 + $0x24] sm:$0xf] }
 0x336   : > { %v968_v3 = vpop.xlane.xlu0 %967 }
 0x337   : > { %1992 = vrcp.f32 %v968_v3  ;;  %v962_v4 = vpop.xlane.xlu1 %961  ;;  %v1767_v3 = vor.u32 %v1912_v1, %v1766_v63 }
 0x338   : > { %1994 = vrcp.f32 %v962_v4  ;;  %v1768_v4 = vld [vmem:[%s2587_s7 + $0x28] sm:$0xf0] }
 0x33b   : > { %v1991_v5 = vpop.eup %1990 }
 0x33c   : > { %v979_v6 = vmul.f32 %v1991_v5, %v1983_v51  ;;  %v1914_v51 = vld [vmem:[%s2587_s7 + $0x34] sm:$0xf0]  ;;  %v1800_v5 = vld [vmem:[%s2589_s9 + $0x20] sm:$0xf] }
 0x33d   : > { %v1993_v7 = vpop.eup %1992  ;;  %v1775_v52 = vor.u32 %v1914_v51, %v1774_v50  ;;  %v1927_v50 = vld [vmem:[%s2588_s8 + $0x20] sm:$0xff]  ;;  %v1926_v51 = vld [vmem:[%s2588_s8 + $0x18] sm:$0xff] }
 0x33e   : > { %v983_v8 = vpack.c.bf16 %v979_v6, %v979_v6  ;;  %v978_v9 = vmul.f32 %v1993_v7, %v1985_v54  ;;  %v1995_v10 = vpop.eup %1994  ;;  %v1808_v54 = vld [vmem:[%s2589_s9 + $0x30] sm:$0xf]  ;;  %v1920_v6 = vld [vmem:[%s2589_s9 + $0x24] sm:$0xf0]  ;;  %v1771_v7 = vor.u32 %v1911_v2, %v1768_v4 }
 0x33f   : > { %v976_v12 = vmul.f32 %v1995_v10, %v1987_v58  ;;  %v965_v13 = vpop.xlane.xlu0 %964  ;;  %v1809_v58 = vor.u32 %v1922_v55, %v1808_v54  ;;  %v1802_v10 = vld [vmem:[%s2589_s9 + $0x28] sm:$0xf0] }
 0x340   : > { %v982_v11 = vpack.c.bf16 %v978_v9, %v978_v9  ;;  %1727 = vmatmul.msk.bf16.vlgmr.msrb.gmra.mxu3 %vm812_vm5, %v983_v8  ;;  %1996 = vrcp.f32 %v965_v13  ;;  %v1801_v8 = vor.u32 %v1920_v6, %v1800_v5  ;;  %v1919_v9 = vld [vmem:[%s2589_s9 + $0x24] sm:$0xf]  ;;  %v1910_v13 = vld [vmem:[%s2587_s7 + $0x14] sm:$0xf0]  ;;  %v1924_v54 = vld [vmem:[%s2588_s8 + $0x8] sm:$0xff] }
 0x341   : > { %v980_v14 = vpack.c.bf16 %v976_v12, %v976_v12  ;;  %v1758_v12 = vld [vmem:[%s2587_s7 + $0x10] sm:$0xf]  ;;  %v1932_v55 = vld [vmem:[%s2588_s8 + $0x48] sm:$0xff] }
 0x342   : > { %1726 = vmatmul.msk.bf16.vlgmr.msra.gmra.mxu2 %vm812_vm5, %v982_v11  ;;  %v1805_v11 = vor.u32 %v1919_v9, %v1802_v10 }
 0x343   : > { %1724 = vmatmul.msk.bf16.vlgmr.msra.gmra.mxu0 %vm812_vm5, %v980_v14  ;;  %1310 = vmatpush.bf16.msra.mxu2 %v1809_v58  ;;  %v1909_v14 = vld [vmem:[%s2587_s7 + $0x14] sm:$0xf]  ;;  %v1931_v58 = vld [vmem:[%s2588_s8 + $0x40] sm:$0xff] }
 0x344   : > { %1236 = vmatpush.bf16.msra.mxu0 %v1775_v52  ;;  %v1925_v52 = vld [vmem:[%s2588_s8 + $0x10] sm:$0xff] }
 0x346   : > { %v1997_v15 = vpop.eup %1996 }
 0x347   : > { %v977_v16 = vmul.f32 %v1997_v15, %v1989_v62  ;;  %v1813_v62 = vor.u32 %v1921_v60, %v1810_v61  ;;  %1311 = vmatpush.bf16.msra.mxu2 %v1801_v8  ;;  %v1759_v15 = vor.u32 %v1910_v13, %v1758_v12 }
 0x348   : > { %1237 = vmatpush.bf16.msra.mxu0 %v1767_v3 }
 0x349   : > { %v981_v59 = vpack.c.bf16 %v977_v16, %v977_v16  ;;  %1323 = vmatpush.bf16.msrb.mxu3 %v1813_v62  ;;  %v1760_v16 = vld [vmem:[%s2587_s7 + $0x18] sm:$0xf0] }
 0x34a   : > { %v1763_v18 = vor.u32 %v1909_v14, %v1760_v16 }
 0x34b   : > { %1725 = vmatmul.msk.bf16.vlgmr.msrb.gmra.mxu1 %vm812_vm5, %v981_v59  ;;  %v1792_v59 = vld [vmem:[%s2589_s9 + $0x10] sm:$0xf] }
 0x34c   : > { %v1793_v19 = vor.u32 %v1918_v17, %v1792_v59  ;;  %1238 = vmatpush.bf16.msra.mxu0 %v1759_v15 }
 0x34d   : > { %1324 = vmatpush.bf16.msrb.mxu3 %v1805_v11 }
 0x34e   : > { %1312 = vmatpush.bf16.msra.mxu2 %v1793_v19 }
 0x3c0   : > { %v1000_v20 = vpop.f32.mrf.mxu0 }
 0x3c1   : > { %v1055_v21 = vpack.c.bf16 %v1000_v20, %v1000_v20  ;;  %v1917_v20 = vld [vmem:[%s2589_s9 + $0x14] sm:$0xf] }
 0x3c3   : > { %v1051_v22 = vpop.f32.mrf.mxu3  ;;  %1732 = vmatmul.msk.bf16.vlgmr.msrb.gmra.mxu0 %vm865_vm6, %v1055_v21  ;;  %v1794_v21 = vld [vmem:[%s2589_s9 + $0x18] sm:$0xf0] }
 0x3c4   : > { %v1058_v23 = vpack.c.bf16 %v1051_v22, %v1051_v22  ;;  %v1797_v22 = vor.u32 %v1917_v20, %v1794_v21 }
 0x3c5   : > { %v1035_v25 = vpop.f32.mrf.mxu2 }
 0x3c6   : > { %v1057_v32 = vpack.c.bf16 %v1035_v25, %v1035_v25  ;;  %1747 = vmatmul.msk.bf16.vlgmr.msra.gmra.mxu3 %vm865_vm6, %v1058_v23  ;;  %v1750_v23 = vld [vmem:[%s2587_s7] sm:$0xf]  ;;  %v1908_v25 = vld [vmem:[%s2587_s7 + $0x4] sm:$0xf0] }
 0x3c7   : > { %1325 = vmatpush.bf16.msrb.mxu3 %v1797_v22 }
 0x3c8   : > { %1742 = vmatmul.msk.bf16.vlgmr.msrb.gmra.mxu2 %vm865_vm6, %v1057_v32  ;;  %v1002_v26 = vpop.f32.mrf.mxu0  ;;  %v1016_v27 = vpop.f32.mrf.mxu1  ;;  %v1907_v32 = vld [vmem:[%s2587_s7 + $0x4] sm:$0xf] }
 0x3c9   : > { %v1056_v56 = vpack.c.bf16 %v1016_v27, %v1016_v27  ;;  %v1751_v26 = vor.u32 %v1908_v25, %v1750_v23  ;;  %v1752_v27 = vld [vmem:[%s2587_s7 + $0x8] sm:$0xf0] }
 0x3cb   : > { %v1053_v24 = vpop.f32.mrf.mxu3  ;;  %1737 = vmatmul.msk.bf16.vlgmr.msra.gmra.mxu1 %vm865_vm6, %v1056_v56  ;;  %v1784_v56 = vld [vmem:[%s2589_s9] sm:$0xf]  ;;  %1239 = vmatpush.bf16.msra.mxu0 %v1751_v26 }
 0x3cc   : > { %v1916_v24 = vld [vmem:[%s2589_s9 + $0x4] sm:$0xf0] }
 0x3cd   : > { %v1037_v28 = vpop.f32.mrf.mxu2 }
 0x3ce   : > { %v1755_v28 = vor.u32 %v1907_v32, %v1752_v27 }
 0x3d0   : > { %v1018_v29 = vpop.f32.mrf.mxu1 }
 0x3d1   : > { %v1785_v29 = vor.u32 %v1916_v24, %v1784_v56 }
 0x3d3   : > { %1313 = vmatpush.bf16.msra.mxu2 %v1785_v29 }
 0x440   : > { %v1085_v31 = vpop.f32.mrf.mxu0 }
 0x441   : > { %v1155_v33 = vsel %vm360_vm0, %v1085_v31, 0.0  ;;  %v1915_v31 = vld [vmem:[%s2589_s9 + $0x4] sm:$0xf] }
 0x448   : > { %v1087_v34 = vpop.f32.mrf.mxu0  ;;  %v1107_v35 = vpop.f32.mrf.mxu1 }
 0x449   : > { %v1156_v36 = vsel %vm360_vm0, %v1107_v35, 0.0  ;;  %v1151_v37 = vpop.f32.mrf.mxu3  ;;  %v1786_v34 = vld [vmem:[%s2589_s9 + $0x8] sm:$0xf0] }
 0x44a   : > { %v1157_v38 = vadd.f32 %v1156_v36, %v1155_v33  ;;  %v1160_v42 = vsel %vm360_vm0, %v1151_v37, 0.0  ;;  %v1789_v35 = vor.u32 %v1915_v31, %v1786_v34 }
 0x44b   : > { %v1129_v39 = vpop.f32.mrf.mxu2 }
 0x44c   : > { %v1158_v40 = vsel %vm360_vm0, %v1129_v39, 0.0  ;;  %1326 = vmatpush.bf16.msrb.mxu3 %v1789_v35 }
 0x44d   : > { %v1159_v41 = vadd.f32 %v1158_v40, %v1157_v38 }
 0x44f   : > { %v1161_v43 = vadd.f32 %v1160_v42, %v1159_v41 }
 0x450   : > { %v1109_v45 = vpop.f32.mrf.mxu1 }
 0x451   : > { %v2402_v44 = vadd.f32 %v1161_v43, %v2184_v0  ;;  %v1153_v46 = vpop.f32.mrf.mxu3  ;;  %v1913_v0 = vld [vmem:[%s2587_s7 + $0x34] sm:$0xf] }
 0x452   : > { %v1779_v57 = vor.u32 %v1913_v0, %v1776_v53  ;;  %v1934_v0 = vld [vmem:[%s2588_s8 + $0x58] sm:$0xff]  ;;  %v1933_v53 = vld [vmem:[%s2588_s8 + $0x50] sm:$0xff] }
 0x453   : > { %v1131_v47 = vpop.f32.mrf.mxu2  ;;  %v1163_v48 = vmul.f32 %v2402_v44, %v2402_v44 }
 0x454   : > { %1249 = vmatpush.bf16.msrb.mxu1 %v1779_v57  ;;  %v1923_v57 = vld [vmem:[%s2588_s8] sm:$0xff] }
 0x455   : > { %v1164_v49 = vsel %vm360_vm0, %v1163_v48, 0.0  ;;  %v1929_v48 = vld [vmem:[%s2588_s8 + $0x30] sm:$0xff] }
 0x456   : > { %1165 = vadd.xlane.f32.xlu2 %v1164_v49  ;;  %v1928_v49 = vld [vmem:[%s2588_s8 + $0x28] sm:$0xff] }
 0x458   : > { %1250 = vmatpush.bf16.msrb.mxu1 %v1771_v7 }
 0x45c   : > { %1251 = vmatpush.bf16.msrb.mxu1 %v1763_v18 }
 0x460   : > { %1252 = vmatpush.bf16.msrb.mxu1 %v1755_v28 }
 0x464   : > { %1492 = vmatpush.bf16.msra.mxu1 %v1934_v0 }
 0x468   : > { %1493 = vmatpush.bf16.msra.mxu1 %v1933_v53 }
 0x46c   : > { %1494 = vmatpush.bf16.msra.mxu1 %v1932_v55 }
 0x470   : > { %1495 = vmatpush.bf16.msra.mxu1 %v1931_v58 }
 0x4c9   : > { %v1166_v33 = vpop.xlane.xlu2 %1165 }
 0x4ca   : > { %v1167_v36 = vmul.f32 %v1166_v33, %v2252_v30  ;;  %v1930_v30 = vld [vmem:[%s2588_s8 + $0x38] sm:$0xff] }
 0x4cb   : > { %1475 = vmatpush.bf16.msrb.mxu0 %v1930_v30 }
 0x4cc   : > { %v1168_v37 = vadd.f32 1e-05, %v1167_v36 }
 0x4ce   : > { %1998 = vrsqrt.f32 %v1168_v37  ;;  %vm1175_vm10 = vweird.f32 %v1168_v37 }
 0x4cf   : > { %1476 = vmatpush.bf16.msrb.mxu0 %v1929_v48 }
 0x4d3   : > { %1477 = vmatpush.bf16.msrb.mxu0 %v1928_v49 }
 0x4d4   : > { %v1999_v38 = vpop.eup %1998 }
 0x4d5   : > { %v1170_v39 = vmul.f32 %v1999_v38, %v1168_v37  ;;  %vm1176_vm9 = vweird.f32 %v1999_v38 }
 0x4d6   : > { %vm1177_vm11 = vmor %vm1175_vm10, %vm1176_vm9 }
 0x4d7   : > { %v1171_v40 = vmul.f32 %v1999_v38, %v1170_v39  ;;  %1478 = vmatpush.bf16.msrb.mxu0 %v1927_v50 }
 0x4d9   : > { %v1172_v41 = vmul.f32 0.5, %v1171_v40 }
 0x4db   : > { %v1173_v42 = vsub.f32 1.5, %v1172_v41  ;;  %1479 = vmatpush.bf16.msrb.mxu0 %v1926_v51 }
 0x4dd   : > { %v1174_v43 = vmul.f32 %v1999_v38, %v1173_v42 }
 0x4df   : > { %v1178_v45 = vsel %vm1177_vm11, %v1999_v38, %v1174_v43  ;;  %1480 = vmatpush.bf16.msrb.mxu0 %v1925_v52 }
 0x4e0   : > { %v1179_v46 = vmul.f32 %v1178_v45, %v2402_v44 }
 0x4e2   : > { %v1180_v47 = vpack.c.bf16 %v1179_v46, %v1179_v46 }
 0x4e3   : > { %1481 = vmatpush.bf16.msrb.mxu0 %v1924_v54 }
 0x4e4   : > { %1780 = vmatmul.msk.bf16.vlgmr.msra.gmra.mxu0 %vm360_vm0, %v1180_v47  ;;  %1781 = vmatmul.msk.bf16.vlgmr.msrb.gmra.mxu1 %vm360_vm0, %v1180_v47 }
 0x4e5   : > { %1814 = vmatmul.msk.bf16.vlgmr.msra.gmra.mxu2 %vm360_vm0, %v1180_v47  ;;  %1815 = vmatmul.msk.bf16.vlgmr.msrb.gmra.mxu3 %vm360_vm0, %v1180_v47 }
 0x4e7   : > { %1482 = vmatpush.bf16.msrb.mxu0 %v1923_v57 }
 0x561   : > { %v1241_v60 = vpop.f32.mrf.mxu0  ;;  %v1254_v61 = vpop.f32.mrf.mxu1 }
 0x562   : > { %v1816_v62 = vmul.f32 -1.442695, %v1241_v60  ;;  %v1817_v63 = vmul.f32 -1.442695, %v1254_v61 }
 0x564   : > { %2000 = vpow2.f32 %v1816_v62 }
 0x565   : > { %2002 = vpow2.f32 %v1817_v63 }
 0x568   : > { %v1315_v1 = vpop.f32.mrf.mxu2  ;;  %v1328_v2 = vpop.f32.mrf.mxu3 }
 0x569   : > { %v1243_v3 = vpop.f32.mrf.mxu0  ;;  %v1256_v4 = vpop.f32.mrf.mxu1 }
 0x56a   : > { %v2001_v5 = vpop.eup %2000 }
 0x56b   : > { %v2003_v6 = vpop.eup %2002  ;;  %v1338_v7 = vadd.f32 1.0, %v2001_v5 }
 0x56c   : > { %v1339_v8 = vadd.f32 1.0, %v2003_v6 }
 0x56d   : > { %2004 = vrcp.f32 %v1338_v7  ;;  %v1351_v16 = vand.u32 2147483648, %v1338_v7  ;;  %v1349_v18 = vand.u32 2147483647, %v1338_v7  ;;  %vm1345_vm14 = vweird.f32 %v1338_v7 }
 0x56e   : > { %2006 = vrcp.f32 %v1339_v8  ;;  %v1366_v19 = vand.u32 2147483648, %v1339_v8  ;;  %v1364_v21 = vand.u32 2147483647, %v1339_v8  ;;  %vm1360_vm1 = vweird.f32 %v1339_v8 }
 0x56f   : > { %v1352_v23 = vor.u32 1.1754944e-38, %v1351_v16  ;;  %vm1350_vm2 = vcmp.eq.f32.partialorder %v1349_v18, 8.507059e+37 }
 0x570   : > { %v1317_v9 = vpop.f32.mrf.mxu2  ;;  %v1330_v10 = vpop.f32.mrf.mxu3  ;;  %v1367_v26 = vor.u32 1.1754944e-38, %v1366_v19  ;;  %vm1365_vm4 = vcmp.eq.f32.partialorder %v1364_v21, 8.507059e+37 }
 0x573   : > { %v2005_v11 = vpop.eup %2004 }
 0x574   : > { %v2007_v12 = vpop.eup %2006  ;;  %v1341_v13 = vmul.f32 %v2005_v11, %v1338_v7  ;;  %vm1346_vm12 = vweird.f32 %v2005_v11 }
 0x575   : > { %v1356_v14 = vmul.f32 %v2007_v12, %v1339_v8  ;;  %vm1361_vm13 = vweird.f32 %v2007_v12  ;;  %vm1347_vm15 = vmor %vm1345_vm14, %vm1346_vm12 }
 0x576   : > { %v1342_v15 = vsub.f32 1.0, %v1341_v13  ;;  %vm1362_vm3 = vmor %vm1360_vm1, %vm1361_vm13 }
 0x577   : > { %v1357_v59 = vsub.f32 1.0, %v1356_v14 }
 0x578   : > { %v1343_v17 = vmul.f32 %v2005_v11, %v1342_v15 }
 0x579   : > { %v1358_v20 = vmul.f32 %v2007_v12, %v1357_v59 }
 0x57a   : > { %v1344_v22 = vadd.f32 %v2005_v11, %v1343_v17 }
 0x57b   : > { %v1359_v25 = vadd.f32 %v2007_v12, %v1358_v20 }
 0x57c   : > { %v1348_v32 = vsel %vm1347_vm15, %v2005_v11, %v1344_v22 }
 0x57d   : > { %v1353_v27 = vsel %vm1350_vm2, %v1352_v23, %v1348_v32  ;;  %v1363_v56 = vsel %vm1362_vm3, %v2007_v12, %v1359_v25 }
 0x57e   : > { %v1370_v24 = vmul.f32 %v1353_v27, %v1241_v60  ;;  %v1368_v28 = vsel %vm1365_vm4, %v1367_v26, %v1363_v56 }
 0x57f   : > { %v1371_v29 = vmul.f32 %v1368_v28, %v1254_v61 }
 0x580   : > { %v1372_v31 = vmul.f32 %v1370_v24, %v1315_v1 }
 0x581   : > { %v1373_v34 = vmul.f32 %v1371_v29, %v1328_v2 }
 0x582   : > { %v1374_v35 = vpack.c.bf16 %v1372_v31, %v1372_v31 }
 0x583   : > { %v1375_v33 = vpack.c.bf16 %v1373_v34, %v1373_v34 }
 0x584   : > { %1483 = vmatmul.bf16.vlgmr.msrb.gmra.mxu0 %v1374_v35 }
 0x585   : > { %1866 = vmatmul.msk.bf16.vlgmr.msra.gmra.mxu1 %vm360_vm0, %v1375_v33 }
 0x601   : > { %v1484_v36 = vpop.f32.mrf.mxu0 }
 0x602   : > { %v1497_v37 = vpop.f32.mrf.mxu1 }
 0x603   : > { %v1498_v38 = vadd.f32 %v1497_v37, %v1484_v36 }
 0x605   : > { %v1501_v39 = vadd.f32 %v1498_v38, %v2402_v44 }
 0x607   : > { %1502 = vst.msk [vmem:[%s350_s27] sm:$0xff] %vm360_vm0, %v1501_v39 }
 0x608   : > { %2035 = shalt.err (!%p2032_p3)
}
 0x609   : > { %1935 = dma.vmem_to_hbm [thread:$0]  (%p2169_p5), %s1517_s28, 128, %s1519_s29, %s1504_s30   ;;  %v1486_v44 = vpop.f32.mrf.mxu0 }
 0x60a   : > { %v1499_v40 = vpop.f32.mrf.mxu1 }
 0x60b PF: > { %p1941_p4 = scmp.ge.s32.totalorder %s2070_s16, 2  ;;  %s1530_s12 = sand.u32 1, %s2058_s13  }
 0x60c   : > { %s1531_s27 = scalar_lea.sflag [#allocation3], %s1530_s12 }
 0x60d   : > { %p1938_p7 = pnand %p1941_p4, %p2173_p6 }
 0x60f   : > { %p1939_p8 = pneg %p1938_p7 }
 0x611   : > { %2053 = dma.done.wait (%p1939_p8), %s1531_s27, 128  }
 0x612   : > { %2055 = vsyncadd (%p1939_p8), %s1531_s27, 4294967168  ;;  %p20_p5 = scmp.ge.s32.totalorder %s2156_s19, 4   ;;  %s2593_s13 = smov %s2062_s14 }
 0x613   : > { %s2594_s14 = smov %s2066_s15  ;;  %s2595_s15 = smov %s2167_s22 }
 0x614   : > { %s2596_s16 = smov %s2156_s19  ;;  %22 = sbr.rel (!%p20_p5) target bundleno = 3 (0x3), region = 95 }
 0x619   :  { %1537 = vsyncpa [#allocation3], 1 }
 0x61a   :  { %1539 = vsyncpa [#allocation3 + $0x1], 1 }

</bundles_post_ra>
